<compile_context>
chip_gen: v6e
topology: v6e:2x2x1
jax: 0.10.0
libtpu: 0.0.40
codegen_flags: <defaults>
</compile_context>

<pallas_src>
import functools

import jax
import jax.numpy as jnp
from jax.experimental import pallas as pl
from jax.experimental.pallas import tpu as pltpu

EPS = 1e-5

# Tile budget derived against the smallest target VMEM (v7x: 64 MiB physical);
# v5e/v6e (128 MiB) trivially satisfy the same budget.
_VMEM_TILE_BUDGET = 40 * 1024 * 1024
_VMEM_LIMIT_BYTES = 48 * 1024 * 1024   # scoped-vmem limit handed to Mosaic


def _round_up(x, n):
    return ((x + n - 1) // n) * n


def _vmem_estimate(tm, d_pad, tn):
    """Rough VMEM footprint of one pipelined step (double-buffered blocks + scratch)."""
    x_blk = 2 * tm * d_pad * 4          # f32 x row tile, double-buffered
    o_blk = 2 * tm * tn * 4             # f32 output tile, double-buffered
    w_blk = 2 * d_pad * tn * 2          # bf16 W^T (column) tile, double-buffered
    wb_blk = 2 * 8 * tn * 4             # linear-bias tile
    scratch = tm * d_pad * 2            # bf16 normed(x) scratch (column-tiled path)
    working = 2 * tm * d_pad * 4        # headroom for f32 LN intermediates
    return x_blk + o_blk + w_blk + wb_blk + scratch + working


def _halvings(start, floor):
    t = start
    while t >= floor:
        yield t
        nxt = max(floor, ((t // 2) // 16) * 16)
        if nxt >= t:
            break
        t = nxt


def _choose_tiles(m, d_pad, tm_req):
    """Pick (tm, tn): prefer the whole bf16 weight resident at a large row tile;
    otherwise stream weight column tiles (needed sooner on v7x's 64 MiB VMEM)."""
    tm_cap = max(16, _round_up(min(tm_req, _round_up(m, 16)), 16))
    for tm in _halvings(tm_cap, 128):
        if _vmem_estimate(tm, d_pad, d_pad) <= _VMEM_TILE_BUDGET:
            return tm, d_pad
    tn_cands = [d_pad] + [t for t in (1024, 512, 256, 128)
                          if t < d_pad and d_pad % t == 0]
    for tm in _halvings(tm_cap, 16):
        for tn in tn_cands:
            if _vmem_estimate(tm, d_pad, tn) <= _VMEM_TILE_BUDGET:
                return tm, tn
    return 16, 128


def _layernorm(x, lnb, d_real, d_pad):
    """Faithful LayerNormalization: eps*(x-mean)/(std+eps)+bias, unbiased std.
    Padded lanes hold zeros; statistics are masked to the real width."""
    mean = jnp.sum(x, axis=-1, keepdims=True) * (1.0 / d_real)
    diff = x - mean
    if d_real != d_pad:
        lane = jax.lax.broadcasted_iota(jnp.int32, x.shape, 1)
        diff = jnp.where(lane < d_real, diff, 0.0)
    var = jnp.sum(diff * diff, axis=-1, keepdims=True) * (1.0 / max(d_real - 1, 1))
    inv = pl.reciprocal(jnp.sqrt(var) + EPS, approx=True)     # EUP slot: ~free
    return EPS * diff * inv + lnb


def _residual_kernel_fused(x_ref, w_ref, wb_ref, lnb_ref, o_ref, *, d_real):
    """Whole bf16 W^T resident in VMEM: single fused pass per row tile."""
    d_pad = x_ref.shape[-1]
    x = x_ref[...].astype(jnp.float32)

    # --- LayerNormalization (in registers, no scratch round trip) ---
    normed = _layernorm(x, lnb_ref[0], d_real, d_pad).astype(jnp.bfloat16)

    # --- sublayer: Linear(D, D) on the MXU (bf16 in, f32 accumulation) ---
    z = jnp.dot(normed, w_ref[...], preferred_element_type=jnp.float32)
    z = z + wb_ref[...]

    # --- dropout (eval mode: identity) + residual add, lane-dense f32 store ---
    o_ref[...] = (x + z).astype(o_ref.dtype)


def _residual_kernel_coltile(x_ref, w_ref, wb_ref, lnb_ref, o_ref, normed_ref,
                             *, d_real, tn):
    """Large-D path: W^T streamed in column tiles; normed(x) cached per row tile."""
    j = pl.program_id(1)
    d_pad = x_ref.shape[-1]

    # LayerNorm computed once per row tile (j == 0), cached for all column tiles.
    @pl.when(j == 0)
    def _():
        x = x_ref[...].astype(jnp.float32)
        normed_ref[...] = _layernorm(x, lnb_ref[0], d_real, d_pad).astype(normed_ref.dtype)

    z = jnp.dot(normed_ref[...], w_ref[...], preferred_element_type=jnp.float32)
    z = z + wb_ref[...]

    col0 = pl.multiple_of(j * tn, 128)                 # 128-aligned lane slice of x
    x_cols = x_ref[:, pl.ds(col0, tn)].astype(jnp.float32)
    o_ref[...] = (x_cols + z).astype(o_ref.dtype)


def residual_connection(x, w, wb, ln_bias, *, tm=512):
    """x: (B, S, D) f32. w: (D, D) torch-Linear weight (out, in). wb: (D,). ln_bias: (1,)."""
    b, s, d = x.shape
    m = b * s
    d_pad = _round_up(d, 128)                          # lane-dense last dim
    tm, tn = _choose_tiles(m, d_pad, tm)
    m_pad = _round_up(m, tm)                           # padded tail instead of an assert
    ni, nj = m_pad // tm, d_pad // tn

    x2 = x.reshape(m, d)
    if (m_pad, d_pad) != (m, d):
        x2 = jnp.pad(x2, ((0, m_pad - m), (0, d_pad - d)))

    # One-time weight prep outside the kernel: transpose to (in, out), cast to
    # bf16 (halves VMEM + HBM traffic, feeds the MXU at bf16 peak), zero-pad.
    w_t = jnp.transpose(w).astype(jnp.bfloat16)
    wb_p = wb.astype(jnp.float32)
    if d_pad != d:
        w_t = jnp.pad(w_t, ((0, d_pad - d), (0, d_pad - d)))
        wb_p = jnp.pad(wb_p, (0, d_pad - d))
    wb2 = wb_p.reshape(1, d_pad)
    lnb = ln_bias.reshape(1).astype(jnp.float32)

    if nj == 1:
        kernel = functools.partial(_residual_kernel_fused, d_real=d)
        grid = (ni,)
        in_specs = [
            pl.BlockSpec((tm, d_pad), lambda i: (i, 0)),        # x rows (full width)
            pl.BlockSpec((d_pad, d_pad), lambda i: (0, 0)),     # whole W^T (bf16, resident)
            pl.BlockSpec((1, d_pad), lambda i: (0, 0)),         # linear bias
            pl.BlockSpec(memory_space=pltpu.MemorySpace.SMEM),  # layernorm bias scalar
        ]
        out_specs = pl.BlockSpec((tm, d_pad), lambda i: (i, 0))
        scratch_shapes = []
        dims = ("parallel",)
    else:
        kernel = functools.partial(_residual_kernel_coltile, d_real=d, tn=tn)
        grid = (ni, nj)
        in_specs = [
            pl.BlockSpec((tm, d_pad), lambda i, j: (i, 0)),     # x rows (fetched once per i)
            pl.BlockSpec((d_pad, tn), lambda i, j: (0, j)),     # W^T column tile (bf16)
            pl.BlockSpec((1, tn), lambda i, j: (0, j)),         # linear-bias column tile
            pl.BlockSpec(memory_space=pltpu.MemorySpace.SMEM),  # layernorm bias scalar
        ]
        out_specs = pl.BlockSpec((tm, tn), lambda i, j: (i, j))
        scratch_shapes = [pltpu.VMEM((tm, d_pad), jnp.bfloat16)]  # normed(x) cache
        dims = ("parallel", "arbitrary")

    out = pl.pallas_call(
        kernel,
        out_shape=jax.ShapeDtypeStruct((m_pad, d_pad), x.dtype),
        grid_spec=pltpu.PrefetchScalarGridSpec(
            num_scalar_prefetch=0,
            grid=grid,
            in_specs=in_specs,
            out_specs=out_specs,
            scratch_shapes=scratch_shapes,
        ),
        compiler_params=pltpu.CompilerParams(
            dimension_semantics=dims,
            vmem_limit_bytes=_VMEM_LIMIT_BYTES,
        ),
    )(x2, w_t, wb2, lnb)

    if (m_pad, d_pad) != (m, d):
        out = out[:m, :d]
    return out.reshape(b, s, d)


def _reference(x, w, wb, ln_bias):
    # Pure-JAX reference mirroring the PyTorch module semantics (eval-mode dropout).
    mean = jnp.mean(x, axis=-1, keepdims=True)
    std = jnp.std(x, axis=-1, keepdims=True, ddof=1)
    normed = EPS * (x - mean) / (std + EPS) + ln_bias[0]
    z = jnp.einsum("bsd,od->bso", normed, w) + wb
    return x + z


if __name__ == "__main__":
    key = jax.random.PRNGKey(0)
    kx, kw, kb = jax.random.split(key, 3)

    B, S, D = 2, 8, 32
    x = jax.random.normal(kx, (B, S, D), dtype=jnp.float32)

    # Deterministic synthetic "sublayer" (Linear) parameters, torch-style shapes.
    bound = 1.0 / (D ** 0.5)
    w = jax.random.uniform(kw, (D, D), jnp.float32, -bound, bound)   # (out, in)
    wb = jax.random.uniform(kb, (D,), jnp.float32, -bound, bound)
    ln_bias = jnp.zeros((1,), jnp.float32)                           # LayerNormalization.bias

    out = residual_connection(x, w, wb, ln_bias)
    out = jax.block_until_ready(out)

    ref = _reference(x, w, wb, ln_bias)
    assert out.shape == x.shape
    # Tolerance relaxed vs f32-exact because the MXU path uses bf16 operands and
    # the LN scale uses the approximate EUP reciprocal (errors are ~1e-6 here).
    err = float(jnp.max(jnp.abs(out - ref)))
    assert err < 1e-4, f"mismatch vs reference: max abs err {err}"

    print("KERNEL_OK")
</pallas_src>

<mosaic_0001>
module attributes {stable_mosaic.version = 11 : i64} {
  func.func @_residual_kernel_fused(%arg0: i32, %arg1: memref<16x128xf32, #tpu.memory_space<vmem>>, %arg2: memref<128x128xbf16, #tpu.memory_space<vmem>>, %arg3: memref<1x128xf32, #tpu.memory_space<vmem>>, %arg4: memref<1xf32, #tpu.memory_space<smem>>, %arg5: memref<16x128xf32, #tpu.memory_space<vmem>>) attributes {dimension_semantics = [#tpu.dimension_semantics<parallel>], iteration_bounds = array<i64: 1>, scalar_prefetch = 0 : i64, scratch_operands = 0 : i64, tpu.core_type = #tpu.core_type<tc>, window_params = [{transform_indices = @transform_0, window_bounds = array<i64: 16, 128>}, {pipeline_mode = #tpu.pipeline_mode<synchronous>, transform_indices = @transform_1, window_bounds = array<i64: 128, 128>}, {pipeline_mode = #tpu.pipeline_mode<synchronous>, transform_indices = @transform_2, window_bounds = array<i64: 1, 128>}, {transform_indices = @transform_3, window_bounds = array<i64: 1>}, {transform_indices = @transform_4, window_bounds = array<i64: 16, 128>}]} {
    %c0 = arith.constant 0 : index
    %c0_0 = arith.constant 0 : index
    %0 = vector.load %arg1[%c0, %c0_0] : memref<16x128xf32, #tpu.memory_space<vmem>>, vector<16x128xf32>
    %c0_1 = arith.constant 0 : index
    %1 = memref.load %arg4[%c0_1] : memref<1xf32, #tpu.memory_space<smem>>
    %cst = arith.constant dense<0.000000e+00> : vector<16xf32>
    %2 = vector.multi_reduction <add>, %0, %cst [1] : vector<16x128xf32> to vector<16xf32>
    %3 = vector.shape_cast %2 : vector<16xf32> to vector<16x1xf32>
    %cst_2 = arith.constant 3.125000e-02 : f32
    %4 = vector.broadcast %cst_2 : f32 to vector<16x1xf32>
    %5 = arith.mulf %3, %4 : vector<16x1xf32>
    %6 = vector.broadcast %5 : vector<16x1xf32> to vector<16x128xf32>
    %7 = arith.subf %0, %6 : vector<16x128xf32>
    %8 = tpu.iota {dimensions = array<i32: 1>} : vector<16x128xi32>
    %c32_i32 = arith.constant 32 : i32
    %9 = vector.broadcast %c32_i32 : i32 to vector<16x128xi32>
    %10 = arith.cmpi slt, %8, %9 : vector<16x128xi32>
    %cst_3 = arith.constant 0.000000e+00 : f32
    %11 = vector.broadcast %cst_3 : f32 to vector<16x128xf32>
    %12 = arith.select %10, %7, %11 : vector<16x128xi1>, vector<16x128xf32>
    %13 = arith.mulf %12, %12 : vector<16x128xf32>
    %cst_4 = arith.constant dense<0.000000e+00> : vector<16xf32>
    %14 = vector.multi_reduction <add>, %13, %cst_4 [1] : vector<16x128xf32> to vector<16xf32>
    %15 = vector.shape_cast %14 : vector<16xf32> to vector<16x1xf32>
    %cst_5 = arith.constant 0.0322580636 : f32
    %16 = vector.broadcast %cst_5 : f32 to vector<16x1xf32>
    %17 = arith.mulf %15, %16 : vector<16x1xf32>
    %18 = math.sqrt %17 : vector<16x1xf32>
    %cst_6 = arith.constant 9.99999974E-6 : f32
    %19 = vector.broadcast %cst_6 : f32 to vector<16x1xf32>
    %20 = arith.addf %18, %19 : vector<16x1xf32>
    %21 = tpu.reciprocal %20 {approx = true} : vector<16x1xf32> -> vector<16x1xf32>
    %cst_7 = arith.constant 9.99999974E-6 : f32
    %22 = vector.broadcast %cst_7 : f32 to vector<16x128xf32>
    %23 = arith.mulf %22, %12 : vector<16x128xf32>
    %24 = vector.broadcast %21 : vector<16x1xf32> to vector<16x128xf32>
    %25 = arith.mulf %23, %24 : vector<16x128xf32>
    %26 = vector.broadcast %1 : f32 to vector<16x128xf32>
    %27 = arith.addf %25, %26 : vector<16x128xf32>
    %28 = arith.truncf %27 : vector<16x128xf32> to vector<16x128xbf16>
    %c0_8 = arith.constant 0 : index
    %c0_9 = arith.constant 0 : index
    %29 = vector.load %arg2[%c0_8, %c0_9] : memref<128x128xbf16, #tpu.memory_space<vmem>>, vector<128x128xbf16>
    %cst_10 = arith.constant dense<0.000000e+00> : vector<16x128xf32>
    %30 = tpu.matmul %28, %29, %cst_10 {dimension_numbers = #tpu.dot_dimension_numbers<[1], [0], [0], [1], [0, 0, 1, 1], [], []>} : vector<16x128xbf16>, vector<128x128xbf16>, vector<16x128xf32> -> vector<16x128xf32>
    %c0_11 = arith.constant 0 : index
    %c0_12 = arith.constant 0 : index
    %31 = vector.load %arg3[%c0_11, %c0_12] : memref<1x128xf32, #tpu.memory_space<vmem>>, vector<1x128xf32>
    %32 = vector.broadcast %31 : vector<1x128xf32> to vector<16x128xf32>
    %33 = arith.addf %30, %32 : vector<16x128xf32>
    %34 = arith.addf %0, %33 : vector<16x128xf32>
    %c0_13 = arith.constant 0 : index
    %c0_14 = arith.constant 0 : index
    %35 = vector.load %arg5[%c0_13, %c0_14] : memref<16x128xf32, #tpu.memory_space<vmem>>, vector<16x128xf32>
    tpu.vector_store %arg5[%c0_13, %c0_14], %34 {strides = array<i32>} : memref<16x128xf32, #tpu.memory_space<vmem>>, vector<16x128xf32>,
    return
  }
  func.func @transform_0(%arg0: i32) -> (i32, i32) {
    %c0_i32 = arith.constant 0 : i32
    %c0_i32_0 = arith.constant 0 : i32
    return %arg0, %c0_i32 : i32, i32
  }
  func.func @transform_1(%arg0: i32) -> (i32, i32) {
    %c0_i32 = arith.constant 0 : i32
    %c0_i32_0 = arith.constant 0 : i32
    %c0_i32_1 = arith.constant 0 : i32
    return %c0_i32, %c0_i32_0 : i32, i32
  }
  func.func @transform_2(%arg0: i32) -> (i32, i32) {
    %c0_i32 = arith.constant 0 : i32
    %c0_i32_0 = arith.constant 0 : i32
    %c0_i32_1 = arith.constant 0 : i32
    return %c0_i32, %c0_i32_0 : i32, i32
  }
  func.func @transform_3(%arg0: i32) -> i32 {
    %c0_i32 = arith.constant 0 : i32
    %c0_i32_0 = arith.constant 0 : i32
    return %c0_i32 : i32
  }
  func.func @transform_4(%arg0: i32) -> (i32, i32) {
    %c0_i32 = arith.constant 0 : i32
    %c0_i32_0 = arith.constant 0 : i32
    return %arg0, %c0_i32 : i32, i32
  }
}

</mosaic_0001>

<bundles_post_ra>
// kernel: tpu_custom_call.1
= control target key start
LH: loop header
LB: loop body
LE: loop exit
PB: predicated region body
PF: predicated region fallthrough
CT: control target
= control target key end

     0   :  { %10 = vsyncpa [#allocation4], 0  ;;  %s426_s0 = inlined_call_operand.hbm [shape: f32[16,128], index: 0, kind: input, shape index: {}]   ;;  %s427_s1 = inlined_call_operand.hbm [shape: bf16[128,128], index: 1, kind: input, shape index: {}]   ;;  %s428_s2 = inlined_call_operand.vmem [shape: f32[1,128], index: 2, kind: input, shape index: {}]   ;;  %s429_s3 = inlined_call_operand.<no memory space> [shape: f32[1], index: 3, kind: input, shape index: {}]   ;;  %s430_s4 = inlined_call_operand.hbm [shape: f32[16,128], index: 4, kind: output, shape index: {}]  }
   0x1   :  { %11 = vsyncpa [#allocation7], 0 }
   0x2   :  { %12 = vsyncpa [#allocation5], 0  ;;  %s361_s15 = smov [#allocation3]  }
   0x3   :  { %s18_s16 = sshll.u32 %s361_s15, 4  ;;  %s19_s16 = int_to_ptr.vmem [resolvable:$true] %s18_s16 }
   0x4   :  { %s303_s17 = scalar_lea.vmem %s19_s16, 256  ;;  %p308_p1 = scmp.lt.s32.totalorder %s19_s16, %s19_s16 }
   0x5   :  { %p304_p0 = scmp.ne.s32.totalorder %s19_s16, %s303_s17  ;;  %p309_p2 = scmp.lt.s32.totalorder %s303_s17, %s303_s17 }
   0x7   :  { %p310_p3 = por %p309_p2, %p308_p1 }
   0x9   :  { %p311_p4 = pnand %p310_p3, %p304_p0 }
   0xb   :  { %314 = shalt.err (!%p311_p4)
}
   0xc   :  { %s362_s18 = smov 128   ;;  %s363_s19 = smov 8  }
   0xd   :  { %24 = dma.hbm_to_vmem [thread:$0]  %s426_s0, 256, %s19_s16, [#allocation4], %s362_s18, %s362_s18, %s363_s19  }
   0xe   :  { %s364_s22 = smov [#allocation6]  }
   0xf   :  { %s30_s23 = sshll.u32 %s364_s22, 4  ;;  %s31_s23 = int_to_ptr.vmem [resolvable:$true] %s30_s23 }
  0x10   :  { %s323_s24 = scalar_lea.vmem %s31_s23, 1024  ;;  %p328_p6 = scmp.lt.s32.totalorder %s31_s23, %s31_s23 }
  0x11   :  { %p324_p5 = scmp.ne.s32.totalorder %s31_s23, %s323_s24  ;;  %p329_p7 = scmp.lt.s32.totalorder %s323_s24, %s323_s24 }
  0x13   :  { %p330_p8 = por %p329_p7, %p328_p6 }
  0x15   :  { %p331_p9 = pnand %p330_p8, %p324_p5 }
  0x17   :  { %334 = shalt.err (!%p331_p9)
}
  0x18   :  { %s365_s25 = smov 64   ;;  %s366_s26 = smov 4  }
  0x19   :  { %36 = dma.hbm_to_vmem [thread:$0]  %s427_s1, 1024, %s31_s23, [#allocation7], %s365_s25, %s365_s25, %s366_s26  }
  0x1a   :  { %355 = dma.done.wait [#allocation4], 256  }
  0x1b   :  { %356 = vsyncadd [#allocation4], 4294967040 }
  0x1c   :  { %357 = dma.done.wait [#allocation7], 1024  }
  0x1d   :  { %358 = vsyncadd [#allocation7], 4294966272  ;;  %v404_v0 = vld [vmem:[#allocation3] sm:$0xff]  ;;  %v406_v1 = vld [vmem:[#allocation3 + $0x8] sm:$0xff]  ;;  %v59_v2 = vlaneseq  ;;  %v367_v15 = vmov 0.0   ;;  %vm368_vm1 = vmmov 0   ;;  %v94_v44 = vstv %s429_s3 }
  0x1e   :  { %51 = vadd.xlane.f32.xlu0 %v404_v0  ;;  %v279_v14 = vld [vmem:[#allocation6 + $0x38] sm:$0xff]   ;;  %250 = vmatprep.subr.bf16.mxu0 %v367_v15  ;;  %v280_v16 = vld [vmem:[#allocation6 + $0x30] sm:$0xff]   ;;  %v281_v17 = vld [vmem:[#allocation6 + $0x28] sm:$0xff]   ;;  %s369_s5 = smov [#allocation8]  }
  0x1f   :  { %v60_v3 = vand.u32 127, %v59_v2  ;;  %251 = vmatpush3.bf16.msra.mxu0 %v279_v14  ;;  %v282_v18 = vld [vmem:[#allocation6 + $0x20] sm:$0xff]   ;;  %v283_v19 = vld [vmem:[#allocation6 + $0x18] sm:$0xff]   ;;  %266 = vmatprep.mubr.msk.bf16.mxu0 %vm368_vm1, %v367_v15  ;;  %v284_v20 = vld [vmem:[#allocation6 + $0x10] sm:$0xff]   ;;  %s219_s6 = sshll.u32 %s369_s5, 4  ;;  %s220_s6 = int_to_ptr.vmem [resolvable:$true] %s219_s6 }
  0x20   :  { %252 = vmatprep.subr.bf16.mxu0 %v367_v15  ;;  %v285_v21 = vld [vmem:[#allocation6 + $0x8] sm:$0xff]   ;;  %v286_v22 = vld [vmem:[#allocation6] sm:$0xff]   ;;  %v232_v49 = vld [vmem:[%s428_s2] ss:$0 sm:$0xff]  ;;  %s335_s3 = scalar_lea.vmem %s220_s6, 256  ;;  %p340_p11 = scmp.lt.s32.totalorder %s220_s6, %s220_s6 }
  0x21   :  { %vm61_vm0 = vcmp.lt.s32.totalorder %v60_v3, 32  ;;  %p336_p10 = scmp.ne.s32.totalorder %s220_s6, %s335_s3  ;;  %p341_p12 = scmp.lt.s32.totalorder %s335_s3, %s335_s3 }
  0x22   :  { %53 = vadd.xlane.f32.xlu0 %v406_v1 }
  0x23   :  { %253 = vmatpush3.bf16.msra.mxu0 %v280_v16  ;;  %p342_p13 = por %p341_p12, %p340_p11 }
  0x24   :  { %254 = vmatprep.subr.bf16.mxu0 %v367_v15 }
  0x25   :  { %p343_p0 = pnand %p342_p13, %p336_p10 }
  0x27   :  { %255 = vmatpush3.bf16.msra.mxu0 %v281_v17 }
  0x28   :  { %256 = vmatprep.subr.bf16.mxu0 %v367_v15 }
  0x2b   :  { %257 = vmatpush3.bf16.msra.mxu0 %v282_v18 }
  0x2c   :  { %258 = vmatprep.subr.bf16.mxu0 %v367_v15 }
  0x2f   :  { %259 = vmatpush3.bf16.msra.mxu0 %v283_v19 }
  0x30   :  { %260 = vmatprep.subr.bf16.mxu0 %v367_v15 }
  0x33   :  { %261 = vmatpush3.bf16.msra.mxu0 %v284_v20 }
  0x34   :  { %262 = vmatprep.subr.bf16.mxu0 %v367_v15 }
  0x37   :  { %263 = vmatpush3.bf16.msra.mxu0 %v285_v21 }
  0x38   :  { %264 = vmatprep.subr.bf16.mxu0 %v367_v15 }
  0x3b   :  { %265 = vmatpush3.bf16.msra.mxu0 %v286_v22 }
  0xa7   :  { %v52_v4 = vpop.xlane.xlu0 %51 }
  0xa8   :  { %v55_v5 = vmul.f32 0.03125, %v52_v4 }
  0xaa   :  { %v57_v6 = vsub.f32 %v404_v0, %v55_v5 }
  0xab   :  { %v54_v7 = vpop.xlane.xlu0 %53 }
  0xac   :  { %v56_v8 = vmul.f32 0.03125, %v54_v7  ;;  %v62_v9 = vsel %vm61_vm0, %v57_v6, 0.0 }
  0xad   :  { %v64_v10 = vmul.f32 %v62_v9, %v62_v9  ;;  %v90_v40 = vmul.f32 1e-05, %v62_v9 }
  0xae   :  { %v58_v11 = vsub.f32 %v406_v1, %v56_v8 }
  0xaf   :  { %66 = vadd.xlane.f32.xlu1 %v64_v10 }
  0xb0   :  { %v63_v12 = vsel %vm61_vm0, %v58_v11, 0.0 }
  0xb1   :  { %v65_v13 = vmul.f32 %v63_v12, %v63_v12  ;;  %v91_v41 = vmul.f32 1e-05, %v63_v12 }
  0xb3   :  { %68 = vadd.xlane.f32.xlu1 %v65_v13 }
 0x138   :  { %v67_v23 = vpop.xlane.xlu1 %66 }
 0x139   :  { %v70_v24 = vmul.f32 0.032258064, %v67_v23 }
 0x13b   :  { %287 = vrsqrt.f32 %v70_v24  ;;  %vm74_vm2 = vcmp.eq.f32.partialorder %v70_v24, inf  ;;  %v77_v29 = vand.u32 2147483648, %v70_v24  ;;  %vm76_vm3 = vcmp.eq.f32.partialorder %v70_v24, 0.0 }
 0x13c   :  { %v69_v25 = vpop.xlane.xlu1 %68 }
 0x13d   :  { %v71_v26 = vmul.f32 0.032258064, %v69_v25 }
 0x13f   :  { %289 = vrsqrt.f32 %v71_v26  ;;  %vm81_vm4 = vcmp.eq.f32.partialorder %v71_v26, inf  ;;  %v84_v35 = vand.u32 2147483648, %v71_v26  ;;  %vm83_vm5 = vcmp.eq.f32.partialorder %v71_v26, 0.0 }
 0x148   :  { %v288_v27 = vpop.eup %287 }
 0x149   :  { %v73_v28 = vmul.f32 %v288_v27, %v70_v24 }
 0x14b   :  { %v75_v30 = vsel %vm74_vm2, %v70_v24, %v73_v28 }
 0x14c   :  { %v290_v31 = vpop.eup %289  ;;  %v78_v32 = vsel %vm76_vm3, %v77_v29, %v75_v30 }
 0x14d   :  { %v86_v33 = vadd.f32 1e-05, %v78_v32  ;;  %v80_v34 = vmul.f32 %v290_v31, %v71_v26 }
 0x14f   :  { %291 = vrcp.f32 %v86_v33  ;;  %v82_v36 = vsel %vm81_vm4, %v71_v26, %v80_v34 }
 0x150   :  { %v85_v37 = vsel %vm83_vm5, %v84_v35, %v82_v36 }
 0x151   :  { %v87_v38 = vadd.f32 1e-05, %v85_v37 }
 0x153   :  { %293 = vrcp.f32 %v87_v38 }
 0x15c   :  { %v292_v39 = vpop.eup %291 }
 0x15d   :  { %v92_v42 = vmul.f32 %v292_v39, %v90_v40 }
 0x15f   :  { %v95_v46 = vadd.f32 %v94_v44, %v92_v42 }
 0x160   :  { %v294_v43 = vpop.eup %293 }
 0x161   :  { %v93_v45 = vmul.f32 %v294_v43, %v91_v41 }
 0x163   :  { %v96_v47 = vadd.f32 %v94_v44, %v93_v45 }
 0x165   :  { %v97_v48 = vpack.c.bf16 %v96_v47, %v95_v46 }
 0x167   :  { %267 = vmatmul.mubr.bf16.vlgmr.msra.gmra.mxu0 %v97_v48 }
 0x227   :  { %v203_v50 = vpop.f32.mrf.mxu0 }
 0x228   :  { %v204_v51 = vadd.f32 %v232_v49, %v203_v50 }
 0x229   :  { %v268_v52 = vpop.f32.mrf.mxu0 }
 0x22a   :  { %v210_v53 = vadd.f32 %v204_v51, %v404_v0 }
 0x22b   :  { %v206_v54 = vpop.f32.mrf.mxu0 }
 0x22c   :  { %212 = vst [vmem:[#allocation8] sm:$0xff] %v210_v53  ;;  %v207_v55 = vadd.f32 %v232_v49, %v206_v54 }
 0x22d   :  { %v269_v56 = vpop.f32.mrf.mxu0 }
 0x22e   :  { %v211_v57 = vadd.f32 %v207_v55, %v406_v1 }
 0x230   :  { %213 = vst [vmem:[#allocation8 + $0x8] sm:$0xff] %v211_v57 }
 0x231   :  { %346 = shalt.err (!%p343_p0)
}
 0x232   :  { %225 = dma.vmem_to_hbm [thread:$0]  %s220_s6, 256, %s430_s4, [#allocation5], %s362_s18, %s362_s18, %s363_s19  }
 0x233   :  { %359 = dma.done.wait [#allocation5], 256  }
 0x234   :  { %360 = vsyncadd [#allocation5], 4294967040 }
 0x235   :  { %229 = vsyncpa [#allocation4], 1 }
 0x236   :  { %230 = vsyncpa [#allocation7], 1 }
 0x237   :  { %231 = vsyncpa [#allocation5], 1 }

</bundles_post_ra>
